<compile_context>
chip_gen: v7x
topology: tpu7x:2x2x1
jax: 0.10.0
libtpu: 0.0.40
codegen_flags: <defaults>
</compile_context>

<pallas_src>
import functools

import jax
import jax.numpy as jnp
import numpy as np
from jax.experimental import pallas as pl
from jax.experimental.pallas import tpu as pltpu


def autopad(k, p=None, d=1):
    """Pad to 'same' shape outputs (mirror of the PyTorch helper)."""
    if d > 1:
        k = d * (k - 1) + 1 if isinstance(k, int) else [d * (x - 1) + 1 for x in k]
    if p is None:
        p = k // 2 if isinstance(k, int) else [x // 2 for x in k]
    return p


def _vmem_capacity_bytes():
    """Physical VMEM per TensorCore; conservative 64 MiB (v7x) fallback."""
    try:
        cap = int(pltpu.get_tpu_info().vmem_capacity_bytes)
        if cap > 0:
            return cap
    except Exception:
        pass
    return 64 << 20


@functools.partial(jax.jit, static_argnames=("s", "p", "d", "eps"))
def focus_forward(x_nchw, w_oihw, gamma, beta, run_mean, run_var,
                  *, s=1, p=None, d=1, eps=1e-5):
    """PyTorch-facing Focus.forward: NCHW in, NCHW out.

    x_nchw: (N, C1, H, W);  w_oihw: (C2, 4*C1, KH, KW)  (Conv2d weight, no bias)
    gamma/beta/run_mean/run_var: (C2,) BatchNorm2d (eval mode).
    """
    assert s == 1 and d == 1, "kernel supports stride=1, dilation=1, groups=1"
    N, C1, H, W = x_nchw.shape
    assert H % 2 == 0 and W % 2 == 0, "Focus requires even spatial dims"
    C2, cin_w, KH, KW = w_oihw.shape
    Cin = 4 * C1
    assert cin_w == Cin, "weight in-channels must be 4*C1"
    assert KH == KW and KH % 2 == 1, "'same' autopad path assumes odd square k"
    pad = autopad(KH, p, d)

    Hs, Ws = H // 2, W // 2            # spatial dims after space-to-depth
    Ho, Wo = Hs, Ws                    # stride-1 'same' conv output
    Hp, Wp = Hs + 2 * pad, Ws + 2 * pad
    F = KH * KW * Cin                  # fat MXU contraction dim
    F_pad = ((F + 127) // 128) * 128   # lane-aligned contraction dim
    itm = x_nchw.dtype.itemsize

    # ---- Focus space-to-depth (PyTorch channel order) as ONE fusible
    # reshape/transpose/pad chain:
    #   channel index = (2*wp + hp)*C1 + c  ==  torch.cat order
    #   [x[...,::2,::2], x[...,1::2,::2], x[...,::2,1::2], x[...,1::2,1::2]].
    # TODO(synk): fuse s2d + pad into the kernel's input DMA so this 4*C1
    #             intermediate never round-trips HBM.
    x6 = x_nchw.reshape(N, C1, Hs, 2, Ws, 2)            # (n, c, hs, hp, ws, wp)
    x_s2d = jnp.transpose(x6, (0, 2, 4, 5, 3, 1)).reshape(N, Hs, Ws, Cin)
    x_pad = jnp.pad(x_s2d, ((0, 0), (pad, pad), (pad, pad), (0, 0)))
    patch_dtype = x_pad.dtype

    # ---- Fold BN scale into the conv weights; keep only the shift in-kernel.
    scale = gamma.astype(jnp.float32) / jnp.sqrt(run_var.astype(jnp.float32) + eps)
    shift = beta.astype(jnp.float32) - run_mean.astype(jnp.float32) * scale
    w_hwio = jnp.transpose(w_oihw, (2, 3, 1, 0))        # (KH, KW, Cin, C2)
    w_folded = (w_hwio * scale[None, None, None, :]).astype(x_nchw.dtype)
    w2d = w_folded.reshape(F, C2)
    w2d = jnp.pad(w2d, ((0, F_pad - F), (0, 0)))        # zero rows for F padding
    shift_row = shift.reshape(1, C2)                    # (1, C2) f32

    # ---- Generation-aware VMEM budget & tiling.
    vmem_cap = _vmem_capacity_bytes()
    in_img_bytes = Hp * Wp * Cin * itm
    single_buf_in = (2 * in_img_bytes) > (vmem_cap // 4)   # v7x: 64 MiB / TC
    in_bufs = 1 if single_buf_in else 2
    c2_phys = ((C2 + 127) // 128) * 128                 # VMEM lane padding

    def footprint(t):
        rows = t * Wo
        halo = t + KH - 1
        return (in_bufs * in_img_bytes                  # resident padded image
                + 2 * rows * c2_phys * itm              # double-buffered out blk
                + 2 * F_pad * c2_phys * itm             # weights (+shift) bufs
                + t * Wo * F_pad * itm                  # patches scratch
                + halo * Wp * Cin * itm                 # x_rows value copy
                + 2 * rows * c2_phys * 4                # f32 acc + SiLU temp
                + (4 << 20))                            # compiler headroom

    budget = (vmem_cap * 3) // 4
    max_rows = 16384                                    # soft per-step row cap

    def aligned(t):
        # output/patches second-to-last dim must be 8-aligned unless full.
        return (t * Wo) % 8 == 0 or t == Ho

    divisors = [t for t in range(Ho, 0, -1) if Ho % t == 0]
    tile_h = None
    for t in divisors:                                  # largest first
        if aligned(t) and t * Wo <= max_rows and footprint(t) <= budget:
            tile_h = t
            break
    if tile_h is None:                                  # degraded-but-correct
        tile_h = min(t for t in divisors if aligned(t))

    n_rt = Ho // tile_h
    halo_rows = tile_h + KH - 1
    tile_rows = tile_h * Wo

    need = footprint(tile_h)
    vmem_limit = int(max(32 << 20,
                         min(int(need * 1.25) + (2 << 20), vmem_cap - (1 << 20))))

    def kernel(x_ref, w_ref, shift_ref, o_ref, patch_ref):
        # x_ref:     (Hp, Wp, Cin)        padded image, resident across row tiles
        # w_ref:     (F_pad, C2)          BN-folded weights (zero rows [F:F_pad))
        # shift_ref: (1, C2)              BN shift (f32)
        # o_ref:     (tile_rows, C2)      unpadded output tile
        # patch_ref: (tile_h, Wo, F_pad)  im2col scratch (VMEM)
        r = pl.program_id(1)
        row0 = pl.multiple_of(r * tile_h, tile_h)
        x_rows = x_ref[pl.ds(row0, halo_rows), :, :]    # (halo, Wp, Cin)

        # In-kernel im2col into the lane-aligned scratch.  The zero tail is
        # rewritten every step: VMEM scratch is uninitialized and per-core, so
        # a "first iteration" guard would not be megacore-safe.
        if F_pad > F:
            patch_ref[:, :, F:] = jnp.zeros((tile_h, Wo, F_pad - F), patch_dtype)
        for kh in range(KH):
            for kw in range(KW):
                f0 = (kh * KW + kw) * Cin
                patch_ref[:, :, f0:f0 + Cin] = x_rows[kh:kh + tile_h, kw:kw + Wo, :]
        patches = patch_ref[...].reshape(tile_rows, F_pad)

        # Single fat MXU matmul, f32 accumulation; no activation/weight upcast.
        # TODO(synk): on v7x, benchmark 9 thin per-tap matmuls accumulated in
        #             the MRB to skip the im2col lane stores entirely.
        acc = jnp.dot(patches, w_ref[...], preferred_element_type=jnp.float32)

        # f32 epilogue: BN shift + SiLU (sigmoid lands on the EUP slot).
        y = acc + shift_ref[...]
        o_ref[...] = (y * jax.nn.sigmoid(y)).astype(o_ref.dtype)

    if single_buf_in:
        # Don't double-buffer the per-image resident block (v7x VMEM pressure).
        x_spec = pl.BlockSpec((None, Hp, Wp, Cin), lambda n, r: (n, 0, 0, 0),
                              pipeline_mode=pl.Buffered(1))
    else:
        x_spec = pl.BlockSpec((None, Hp, Wp, Cin), lambda n, r: (n, 0, 0, 0))

    # Prefer splitting the batch axis across v7x's 2 TensorCores when N >= 2
    # so each core DMAs only its own images; otherwise shard the row tiles.
    dims = ("parallel", "arbitrary") if N >= 2 else ("arbitrary", "parallel")

    out = pl.pallas_call(
        kernel,
        out_shape=jax.ShapeDtypeStruct((N, Ho * Wo, C2), x_nchw.dtype),
        grid=(N, n_rt),
        in_specs=[
            x_spec,
            pl.BlockSpec((F_pad, C2), lambda n, r: (0, 0)),
            pl.BlockSpec((1, C2), lambda n, r: (0, 0)),
        ],
        out_specs=pl.BlockSpec((None, tile_rows, C2), lambda n, r: (n, r, 0)),
        scratch_shapes=[pltpu.VMEM((tile_h, Wo, F_pad), patch_dtype)],
        compiler_params=pltpu.CompilerParams(
            dimension_semantics=dims,
            vmem_limit_bytes=vmem_limit,
        ),
    )(x_pad, w2d, shift_row)

    out_nhwc = out.reshape(N, Ho, Wo, C2)
    return jnp.transpose(out_nhwc, (0, 3, 1, 2))


def _focus_reference(x, w, gamma, beta, run_mean, run_var, eps=1e-5):
    """Pure-JAX reference mirroring the PyTorch Focus module."""
    xs = jnp.concatenate([x[..., ::2, ::2], x[..., 1::2, ::2],
                          x[..., ::2, 1::2], x[..., 1::2, 1::2]], axis=1)
    k = w.shape[2]
    pad = autopad(k)
    y = jax.lax.conv_general_dilated(
        xs.astype(jnp.float32), w.astype(jnp.float32),
        window_strides=(1, 1), padding=((pad, pad), (pad, pad)),
        dimension_numbers=("NCHW", "OIHW", "NCHW"))
    scale = (gamma / jnp.sqrt(run_var + eps)).reshape(1, -1, 1, 1)
    shift = (beta - run_mean * gamma / jnp.sqrt(run_var + eps)).reshape(1, -1, 1, 1)
    y = y * scale + shift
    return y * jax.nn.sigmoid(y)


if __name__ == "__main__":
    # Focus(c1=4, c2=8, k=3) on a (2, 4, 16, 16) NCHW input -> (2, 8, 8, 8).
    key = jax.random.PRNGKey(0)
    kx, kw, kg, kb, km, kv = jax.random.split(key, 6)

    N, C1, H, W = 2, 4, 16, 16
    C2, K = 8, 3
    Cin = 4 * C1

    x = jax.random.normal(kx, (N, C1, H, W), dtype=jnp.float32)
    w = jax.random.normal(kw, (C2, Cin, K, K), dtype=jnp.float32) * 0.1
    # Deterministic synthetic BatchNorm parameters / running stats (eval mode).
    gamma = 1.0 + 0.1 * jax.random.normal(kg, (C2,), dtype=jnp.float32)
    beta = 0.1 * jax.random.normal(kb, (C2,), dtype=jnp.float32)
    run_mean = 0.1 * jax.random.normal(km, (C2,), dtype=jnp.float32)
    run_var = 1.0 + 0.1 * jax.random.uniform(kv, (C2,), dtype=jnp.float32)

    out = focus_forward(x, w, gamma, beta, run_mean, run_var)
    out = jax.block_until_ready(out)

    ref = _focus_reference(x, w, gamma, beta, run_mean, run_var)
    np.testing.assert_allclose(np.asarray(out), np.asarray(ref),
                               atol=1e-4, rtol=1e-4)

    print("KERNEL_OK")
</pallas_src>

<mosaic_0001>
module attributes {stable_mosaic.version = 11 : i64} {
  func.func @kernel(%arg0: i32, %arg1: i32, %arg2: memref<1x10x10x16xf32, #tpu.memory_space<vmem>>, %arg3: memref<256x8xf32, #tpu.memory_space<vmem>>, %arg4: memref<1x8xf32, #tpu.memory_space<vmem>>, %arg5: memref<1x64x8xf32, #tpu.memory_space<vmem>>, %arg6: memref<8x8x256xf32, #tpu.memory_space<vmem>>) attributes {dimension_semantics = [#tpu.dimension_semantics<parallel>, #tpu.dimension_semantics<arbitrary>], iteration_bounds = array<i64: 2, 1>, scalar_prefetch = 0 : i64, scratch_operands = 1 : i64, tpu.core_type = #tpu.core_type<tc>, window_params = [{transform_indices = @transform_0, window_bounds = array<i64: 1, 10, 10, 16>}, {pipeline_mode = #tpu.pipeline_mode<synchronous>, transform_indices = @transform_1, window_bounds = array<i64: 256, 8>}, {pipeline_mode = #tpu.pipeline_mode<synchronous>, transform_indices = @transform_2, window_bounds = array<i64: 1, 8>}, {transform_indices = @transform_3, window_bounds = array<i64: 1, 64, 8>}]} {
    %c8_i32 = arith.constant 8 : i32
    %0 = arith.muli %arg1, %c8_i32 : i32
    %1 = tpu.assume_multiple %0, 8 : i32
    %c0 = arith.constant 0 : index
    %2 = arith.index_cast %1 : i32 to index
    %c0_0 = arith.constant 0 : index
    %c0_1 = arith.constant 0 : index
    %3 = vector.load %arg2[%c0, %2, %c0_0, %c0_1] : memref<1x10x10x16xf32, #tpu.memory_space<vmem>>, vector<1x10x10x16xf32>
    %4 = vector.shape_cast %3 : vector<1x10x10x16xf32> to vector<10x10x16xf32>
    %cst = arith.constant 0.000000e+00 : f32
    %5 = vector.broadcast %cst : f32 to vector<8x8x112xf32>
    %c0_2 = arith.constant 0 : index
    %c0_3 = arith.constant 0 : index
    %c144 = arith.constant 144 : index
    %6 = vector.load %arg6[%c0_2, %c0_3, %c144] : memref<8x8x256xf32, #tpu.memory_space<vmem>>, vector<8x8x112xf32>
    tpu.vector_store %arg6[%c0_2, %c0_3, %c144], %5 {strides = array<i32>} : memref<8x8x256xf32, #tpu.memory_space<vmem>>, vector<8x8x112xf32>,
    %7 = vector.extract_strided_slice %4 {offsets = [0, 0, 0], sizes = [8, 8, 16], strides = [1, 1, 1]} : vector<10x10x16xf32> to vector<8x8x16xf32>
    %c0_4 = arith.constant 0 : index
    %c0_5 = arith.constant 0 : index
    %c0_6 = arith.constant 0 : index
    %8 = vector.load %arg6[%c0_4, %c0_5, %c0_6] : memref<8x8x256xf32, #tpu.memory_space<vmem>>, vector<8x8x16xf32>
    tpu.vector_store %arg6[%c0_4, %c0_5, %c0_6], %7 {strides = array<i32>} : memref<8x8x256xf32, #tpu.memory_space<vmem>>, vector<8x8x16xf32>,
    %9 = vector.extract_strided_slice %4 {offsets = [0, 1, 0], sizes = [8, 8, 16], strides = [1, 1, 1]} : vector<10x10x16xf32> to vector<8x8x16xf32>
    %c0_7 = arith.constant 0 : index
    %c0_8 = arith.constant 0 : index
    %c16 = arith.constant 16 : index
    %10 = vector.load %arg6[%c0_7, %c0_8, %c16] : memref<8x8x256xf32, #tpu.memory_space<vmem>>, vector<8x8x16xf32>
    tpu.vector_store %arg6[%c0_7, %c0_8, %c16], %9 {strides = array<i32>} : memref<8x8x256xf32, #tpu.memory_space<vmem>>, vector<8x8x16xf32>,
    %11 = vector.extract_strided_slice %4 {offsets = [0, 2, 0], sizes = [8, 8, 16], strides = [1, 1, 1]} : vector<10x10x16xf32> to vector<8x8x16xf32>
    %c0_9 = arith.constant 0 : index
    %c0_10 = arith.constant 0 : index
    %c32 = arith.constant 32 : index
    %12 = vector.load %arg6[%c0_9, %c0_10, %c32] : memref<8x8x256xf32, #tpu.memory_space<vmem>>, vector<8x8x16xf32>
    tpu.vector_store %arg6[%c0_9, %c0_10, %c32], %11 {strides = array<i32>} : memref<8x8x256xf32, #tpu.memory_space<vmem>>, vector<8x8x16xf32>,
    %13 = vector.extract_strided_slice %4 {offsets = [1, 0, 0], sizes = [8, 8, 16], strides = [1, 1, 1]} : vector<10x10x16xf32> to vector<8x8x16xf32>
    %c0_11 = arith.constant 0 : index
    %c0_12 = arith.constant 0 : index
    %c48 = arith.constant 48 : index
    %14 = vector.load %arg6[%c0_11, %c0_12, %c48] : memref<8x8x256xf32, #tpu.memory_space<vmem>>, vector<8x8x16xf32>
    tpu.vector_store %arg6[%c0_11, %c0_12, %c48], %13 {strides = array<i32>} : memref<8x8x256xf32, #tpu.memory_space<vmem>>, vector<8x8x16xf32>,
    %15 = vector.extract_strided_slice %4 {offsets = [1, 1, 0], sizes = [8, 8, 16], strides = [1, 1, 1]} : vector<10x10x16xf32> to vector<8x8x16xf32>
    %c0_13 = arith.constant 0 : index
    %c0_14 = arith.constant 0 : index
    %c64 = arith.constant 64 : index
    %16 = vector.load %arg6[%c0_13, %c0_14, %c64] : memref<8x8x256xf32, #tpu.memory_space<vmem>>, vector<8x8x16xf32>
    tpu.vector_store %arg6[%c0_13, %c0_14, %c64], %15 {strides = array<i32>} : memref<8x8x256xf32, #tpu.memory_space<vmem>>, vector<8x8x16xf32>,
    %17 = vector.extract_strided_slice %4 {offsets = [1, 2, 0], sizes = [8, 8, 16], strides = [1, 1, 1]} : vector<10x10x16xf32> to vector<8x8x16xf32>
    %c0_15 = arith.constant 0 : index
    %c0_16 = arith.constant 0 : index
    %c80 = arith.constant 80 : index
    %18 = vector.load %arg6[%c0_15, %c0_16, %c80] : memref<8x8x256xf32, #tpu.memory_space<vmem>>, vector<8x8x16xf32>
    tpu.vector_store %arg6[%c0_15, %c0_16, %c80], %17 {strides = array<i32>} : memref<8x8x256xf32, #tpu.memory_space<vmem>>, vector<8x8x16xf32>,
    %19 = vector.extract_strided_slice %4 {offsets = [2, 0, 0], sizes = [8, 8, 16], strides = [1, 1, 1]} : vector<10x10x16xf32> to vector<8x8x16xf32>
    %c0_17 = arith.constant 0 : index
    %c0_18 = arith.constant 0 : index
    %c96 = arith.constant 96 : index
    %20 = vector.load %arg6[%c0_17, %c0_18, %c96] : memref<8x8x256xf32, #tpu.memory_space<vmem>>, vector<8x8x16xf32>
    tpu.vector_store %arg6[%c0_17, %c0_18, %c96], %19 {strides = array<i32>} : memref<8x8x256xf32, #tpu.memory_space<vmem>>, vector<8x8x16xf32>,
    %21 = vector.extract_strided_slice %4 {offsets = [2, 1, 0], sizes = [8, 8, 16], strides = [1, 1, 1]} : vector<10x10x16xf32> to vector<8x8x16xf32>
    %c0_19 = arith.constant 0 : index
    %c0_20 = arith.constant 0 : index
    %c112 = arith.constant 112 : index
    %22 = vector.load %arg6[%c0_19, %c0_20, %c112] : memref<8x8x256xf32, #tpu.memory_space<vmem>>, vector<8x8x16xf32>
    tpu.vector_store %arg6[%c0_19, %c0_20, %c112], %21 {strides = array<i32>} : memref<8x8x256xf32, #tpu.memory_space<vmem>>, vector<8x8x16xf32>,
    %23 = vector.extract_strided_slice %4 {offsets = [2, 2, 0], sizes = [8, 8, 16], strides = [1, 1, 1]} : vector<10x10x16xf32> to vector<8x8x16xf32>
    %c0_21 = arith.constant 0 : index
    %c0_22 = arith.constant 0 : index
    %c128 = arith.constant 128 : index
    %24 = vector.load %arg6[%c0_21, %c0_22, %c128] : memref<8x8x256xf32, #tpu.memory_space<vmem>>, vector<8x8x16xf32>
    tpu.vector_store %arg6[%c0_21, %c0_22, %c128], %23 {strides = array<i32>} : memref<8x8x256xf32, #tpu.memory_space<vmem>>, vector<8x8x16xf32>,
    %c0_23 = arith.constant 0 : index
    %c0_24 = arith.constant 0 : index
    %c0_25 = arith.constant 0 : index
    %25 = vector.load %arg6[%c0_23, %c0_24, %c0_25] : memref<8x8x256xf32, #tpu.memory_space<vmem>>, vector<8x8x256xf32>
    %26 = vector.shape_cast %25 : vector<8x8x256xf32> to vector<64x256xf32>
    %c0_26 = arith.constant 0 : index
    %c0_27 = arith.constant 0 : index
    %27 = vector.load %arg3[%c0_26, %c0_27] : memref<256x8xf32, #tpu.memory_space<vmem>>, vector<256x8xf32>
    %cst_28 = arith.constant dense<0.000000e+00> : vector<64x8xf32>
    %28 = tpu.matmul %26, %27, %cst_28 {dimension_numbers = #tpu.dot_dimension_numbers<[1], [0], [0], [1], [0, 0, 1, 1], [], []>} : vector<64x256xf32>, vector<256x8xf32>, vector<64x8xf32> -> vector<64x8xf32>
    %c0_29 = arith.constant 0 : index
    %c0_30 = arith.constant 0 : index
    %29 = vector.load %arg4[%c0_29, %c0_30] : memref<1x8xf32, #tpu.memory_space<vmem>>, vector<1x8xf32>
    %30 = vector.broadcast %29 : vector<1x8xf32> to vector<64x8xf32>
    %31 = arith.addf %28, %30 : vector<64x8xf32>
    %32 = arith.negf %31 : vector<64x8xf32>
    %33 = math.exp %32 : vector<64x8xf32>
    %cst_31 = arith.constant 1.000000e+00 : f32
    %34 = vector.broadcast %cst_31 : f32 to vector<64x8xf32>
    %35 = arith.addf %34, %33 : vector<64x8xf32>
    %36 = arith.divf %34, %35 : vector<64x8xf32>
    %37 = arith.mulf %31, %36 : vector<64x8xf32>
    %c0_32 = arith.constant 0 : index
    %c0_33 = arith.constant 0 : index
    %c0_34 = arith.constant 0 : index
    %38 = vector.load %arg5[%c0_32, %c0_33, %c0_34] : memref<1x64x8xf32, #tpu.memory_space<vmem>>, vector<1x64x8xf32>
    %39 = vector.shape_cast %38 : vector<1x64x8xf32> to vector<64x8xf32>
    %40 = vector.shape_cast %37 : vector<64x8xf32> to vector<1x64x8xf32>
    tpu.vector_store %arg5[%c0_32, %c0_33, %c0_34], %40 {strides = array<i32>} : memref<1x64x8xf32, #tpu.memory_space<vmem>>, vector<1x64x8xf32>,
    return
  }
  func.func @transform_0(%arg0: i32, %arg1: i32) -> (i32, i32, i32, i32) {
    %c0_i32 = arith.constant 0 : i32
    %c0_i32_0 = arith.constant 0 : i32
    %c0_i32_1 = arith.constant 0 : i32
    %c0_i32_2 = arith.constant 0 : i32
    return %arg0, %c0_i32, %c0_i32_0, %c0_i32_1 : i32, i32, i32, i32
  }
  func.func @transform_1(%arg0: i32, %arg1: i32) -> (i32, i32) {
    %c0_i32 = arith.constant 0 : i32
    %c0_i32_0 = arith.constant 0 : i32
    %c0_i32_1 = arith.constant 0 : i32
    return %c0_i32, %c0_i32_0 : i32, i32
  }
  func.func @transform_2(%arg0: i32, %arg1: i32) -> (i32, i32) {
    %c0_i32 = arith.constant 0 : i32
    %c0_i32_0 = arith.constant 0 : i32
    %c0_i32_1 = arith.constant 0 : i32
    return %c0_i32, %c0_i32_0 : i32, i32
  }
  func.func @transform_3(%arg0: i32, %arg1: i32) -> (i32, i32, i32) {
    %c0_i32 = arith.constant 0 : i32
    %c0_i32_0 = arith.constant 0 : i32
    return %arg0, %arg1, %c0_i32 : i32, i32, i32
  }
}

</mosaic_0001>

<bundles_post_ra>
// kernel: focus_forward.1
= control target key start
LH: loop header
LB: loop body
LE: loop exit
PB: predicated region body
PF: predicated region fallthrough
CT: control target
= control target key end

     0   :  { %s1113_s12 = smov 0   ;;  %s1115_s13 = smov 0   ;;  %s1577_s0 = inlined_call_operand.vmem [shape: f32[2,10,10,16], index: 0, kind: input, shape index: {}]   ;;  %s1578_s1 = inlined_call_operand.vmem [shape: f32[256,8], index: 1, kind: input, shape index: {}]   ;;  %s1579_s2 = inlined_call_operand.vmem [shape: f32[1,8], index: 2, kind: input, shape index: {}]   ;;  %s1580_s3 = inlined_call_operand.vmem [shape: f32[2,64,8], index: 3, kind: output, shape index: {}]  }
   0x1   :  { %s1117_s14 = smov 0  }
   0x2 LB: > { %s25_s15 = sadd.s32 1, %s1079_s13  ;;  %p876_p0 = scmp.ge.s32.totalorder %s1083_s14, 1  ;;  %s1083_s14 = sphi %s1117_s14, %s13_s14   ;;  %s1079_s13 = sphi %s1115_s13, %s1582_s13   ;;  %s1075_s12 = sphi %s1113_s12, %s1581_s12  }
   0x3   : > { %p27_p1 = scmp.ge.s32.totalorder %s25_s15, 2  ;;  %p151_p2 = scmp.lt.s32.totalorder %s1083_s14, 3 }
   0x5   : > { %s1584_s15 = smov (%p27_p1, %s25_s15), 0  ;;  %p152_p3 = pnand %p876_p0, %p151_p2 }
   0x6   : > { %p179_p4 = scmp.lt.s32.totalorder (!%p152_p3), %s1075_s12, 1  ;;  %vm217_vm0 = vcmask (!%p152_p3), 1047680   ;;  %v1085_v0 = vmov (!%p152_p3), 0.0   ;;  %v596_v1 = vld [vmem:[%s1578_s1 + $0x80] sm:$0xff] (!%p152_p3)  ;;  %v597_v2 = vld [vmem:[%s1578_s1 + $0x88] sm:$0xff] (!%p152_p3)  ;;  %vm226_vm1 = vcmask (!%p152_p3), 130048  }
   0x7   : > { %155 = sbr.rel (%p152_p3) target bundleno = 498 (0x1f2), region = 32  ;;  %220 = vst.msk [vmem:[#allocation2 + $0x28] sm:$0xff] (!%p152_p3), %vm217_vm0, %v1085_v0  ;;  %218 = vst.msk [vmem:[#allocation2 + $0x8] sm:$0xff] (!%p152_p3), %vm217_vm0, %v1085_v0  ;;  %v948_v3 = vpack.c.bf16 (!%p152_p3), %v597_v2, %v596_v1  ;;  %v580_v4 = vld [vmem:[%s1578_s1] sm:$0xff] (!%p152_p3)  ;;  %v581_v5 = vld [vmem:[%s1578_s1 + $0x8] sm:$0xff] (!%p152_p3)  ;;  %vm309_vm2 = vcmask (!%p152_p3), 1045504  }
   0x8   : > { %219 = vst.msk [vmem:[#allocation2 + $0x18] sm:$0xff] (!%p152_p3), %vm217_vm0, %v1085_v0  ;;  %221 = vst.msk [vmem:[#allocation2 + $0x38] sm:$0xff] (!%p152_p3), %vm217_vm0, %v1085_v0  ;;  %v950_v6 = vpack.c.bf16 (!%p152_p3), %v581_v5, %v580_v4  ;;  %vm251_vm3 = vcmask (!%p152_p3), 1046528   ;;  %s1086_s28 = smov (!%p152_p3), 48   ;;  %s1087_s29 = smov (!%p152_p3), 32   ;;  %v598_v55 = vld [vmem:[%s1578_s1 + $0x90] sm:$0xff] (!%p152_p3) }
   0x9   : > { %222 = vst.msk [vmem:[#allocation2 + $0x48] sm:$0xff] (!%p152_p3), %vm217_vm0, %v1085_v0  ;;  %223 = vst.msk [vmem:[#allocation2 + $0x58] sm:$0xff] (!%p152_p3), %vm217_vm0, %v1085_v0  ;;  %949 = vmatprep.subr.bf16.mxu0 (!%p152_p3), %v948_v3  ;;  %980 = vmatprep.subr.bf16.mxu1 (!%p152_p3), %v948_v3  ;;  %s1088_s30 = smov (!%p152_p3), 16   ;;  %v599_v60 = vld [vmem:[%s1578_s1 + $0x98] sm:$0xff] (!%p152_p3)  ;;  %s1089_s8 = smov (!%p152_p3), 64   ;;  %v582_v1 = vld [vmem:[%s1578_s1 + $0x10] sm:$0xff] (!%p152_p3) }
   0xa   : > { %224 = vst.msk [vmem:[#allocation2 + $0x68] sm:$0xff] (!%p152_p3), %vm217_vm0, %v1085_v0  ;;  %225 = vst.msk [vmem:[#allocation2 + $0x78] sm:$0xff] (!%p152_p3), %vm217_vm0, %v1085_v0  ;;  %951 = vmatpush3.bf16.msra.mxu0 (!%p152_p3), %v950_v6  ;;  %988 = vmatpush3.bf16.msra.mxu1 (!%p152_p3), %v950_v6  ;;  %v583_v2 = vld [vmem:[%s1578_s1 + $0x18] sm:$0xff] (!%p152_p3)  ;;  %s1090_s10 = smov (!%p152_p3), 80   ;;  %s1091_s7 = smov (!%p152_p3), 96   ;;  %vm300_vm4 = vcmask (!%p152_p3), 261248  }
   0xb   : > { %s1092_s6 = smov (!%p152_p3), 112   ;;  %vm358_vm5 = vcmask (!%p152_p3), 392448   ;;  %vm392_vm6 = vcmask (!%p152_p3), 523648   ;;  %vm429_vm7 = vcmask (!%p152_p3), 654848   ;;  %vm465_vm8 = vcmask (!%p152_p3), 786048  }
   0xc   : > { %vm499_vm9 = vcmask (!%p152_p3), 917248   ;;  %vm536_vm10 = vcmask (!%p152_p3), 1048448   ;;  %vm780_vm11 = vcmask (!%p152_p3), 64512  }
   0xe   : > { %s1586_s12 = smov (!%p179_p4, %s1075_s12), 1 }
   0xf   : > { %s996_s16 = smul.u32 160, %s1586_s12 }
  0x11   : > { %s1149_s27 = scalar_lea.vmem %s1577_s0, %s996_s16 }
  0x12   : > { %v1152_v7 = vld [vmem:[%s1149_s27 + $0x50] sm:$0xff]  ;;  %v197_v9 = vld [vmem:[%s1149_s27] sm:$0xff]  ;;  %v198_v10 = vld [vmem:[%s1149_s27 + $0x8] sm:$0x3] }
  0x13   : > { %v1155_v8 = vld [vmem:[%s1149_s27 + $0x10] sm:$0xff]  ;;  %376 = vrot.lane.b32.xlu1 %v1152_v7, %s1086_s28  ;;  %v310_v11 = vrot.slane %v197_v9, 2  ;;  %v252_v12 = vrot.slane %v197_v9, 1  ;;  %v1164_v13 = vld [vmem:[%s1149_s27 + $0x40] sm:$0xff]  ;;  %227 = vst.msk [vmem:[#allocation2] sm:$0xff] %vm226_vm1, %v197_v9  ;;  %232 = vst.msk [vmem:[#allocation2 + $0x50] sm:$0xff] %vm226_vm1, %v1152_v7 }
  0x14   : > { %368 = vrot.lane.b32.xlu0 %v1155_v8, %s1086_s28  ;;  %228 = vst.msk [vmem:[#allocation2 + $0x10] sm:$0xff] %vm226_vm1, %v1155_v8  ;;  %v311_v14 = vrot.slane %v198_v10, 2  ;;  %v253_v15 = vrot.slane %v198_v10, 1  ;;  %v206_v16 = vld [vmem:[%s1149_s27 + $0x48] sm:$0x3]  ;;  %v322_v17 = vrot.slane %v1164_v13, 2 }
  0x15   : > { %231 = vst.msk [vmem:[#allocation2 + $0x40] sm:$0xff] %vm226_vm1, %v1164_v13  ;;  %v264_v18 = vrot.slane %v1164_v13, 1  ;;  %v323_v19 = vrot.slane %v206_v16, 2  ;;  %v265_v20 = vrot.slane %v206_v16, 1  ;;  %v208_v21 = vld [vmem:[%s1149_s27 + $0x58] sm:$0x3]  ;;  %v952_v16 = vpack.c.bf16 %v599_v60, %v598_v55 }
  0x16   : > { %v1178_v22 = vld [vmem:[%s1149_s27 + $0x18] sm:$0x3]  ;;  %v312_v23 = vsel %vm309_vm2, %v310_v11, %v311_v14  ;;  %v254_v24 = vsel %vm251_vm3, %v252_v12, %v253_v15  ;;  %v1183_v25 = vld [vmem:[%s1149_s27 + $0x60] sm:$0xff]  ;;  %v267_v28 = vrot.slane %v1152_v7, 1  ;;  %v268_v29 = vrot.slane %v208_v21, 1  ;;  %v1200_v31 = vld [vmem:[%s1149_s27 + $0x70] sm:$0xff] }
  0x17   : > { %v1186_v26 = vld [vmem:[%s1149_s27 + $0x20] sm:$0xff]  ;;  %334 = vrot.lane.b32.xlu1 %v312_v23, %s1087_s29  ;;  %v1191_v27 = vsel %vm309_vm2, %v322_v17, %v323_v19  ;;  %v325_v30 = vrot.slane %v1152_v7, 2  ;;  %233 = vst.msk [vmem:[#allocation2 + $0x60] sm:$0xff] %vm226_vm1, %v1183_v25  ;;  %v1205_v32 = vsel %vm251_vm3, %v264_v18, %v265_v20  ;;  %v255_v33 = vrot.slane %v1155_v8, 1  ;;  %234 = vst.msk [vmem:[#allocation2 + $0x70] sm:$0xff] %vm226_vm1, %v1200_v31  ;;  %v1212_v36 = vld [vmem:[%s1149_s27 + $0x30] sm:$0xff] }
  0x18   : > { %276 = vrot.lane.b32.xlu0 %v254_v24, %s1088_s30  ;;  %229 = vst.msk [vmem:[#allocation2 + $0x20] sm:$0xff] %vm226_vm1, %v1186_v26  ;;  %558 = vst.msk [vmem:[#allocation2 + $0x28] sm:$0xff] %vm226_vm1, %v1191_v27  ;;  %v256_v34 = vrot.slane %v1178_v22, 1  ;;  %v326_v35 = vrot.slane %v208_v21, 2  ;;  %v1220_v38 = vld [vmem:[%s1149_s27 + $0x68] sm:$0x3]  ;;  %v1236_v44 = vsel %vm251_vm3, %v267_v28, %v268_v29  ;;  %v954_v17 = vpack.c.bf16 %v583_v2, %v582_v1 }
  0x19   : > { %230 = vst.msk [vmem:[#allocation2 + $0x30] sm:$0xff] %vm226_vm1, %v1212_v36  ;;  %v1223_v39 = vld [vmem:[%s1149_s27 + $0x28] sm:$0x3]  ;;  %v328_v40 = vrot.slane %v1183_v25, 2  ;;  %v329_v41 = vrot.slane %v1220_v38, 2  ;;  %v316_v42 = vrot.slane %v1186_v26, 2  ;;  %953 = vmatprep.subr.bf16.mxu0 %v952_v16  ;;  %981 = vmatprep.subr.bf16.mxu1 %v952_v16 }
  0x1a   : > { %v1217_v37 = vsel %vm309_vm2, %v325_v30, %v326_v35  ;;  %v317_v43 = vrot.slane %v1223_v39, 2  ;;  %v257_v45 = vsel %vm251_vm3, %v255_v33, %v256_v34  ;;  %v1240_v46 = vld [vmem:[%s1149_s27 + $0x78] sm:$0x3]  ;;  %v214_v48 = vld [vmem:[%s1149_s27 + $0x88] sm:$0x3]  ;;  %v313_v49 = vrot.slane %v1155_v8, 2  ;;  %955 = vmatpush3.bf16.msra.mxu0 %v954_v17  ;;  %989 = vmatpush3.bf16.msra.mxu1 %v954_v17 }
  0x1b   : > { %342 = vrot.lane.b32.xlu1 %v1191_v27, %s1087_s29  ;;  %559 = vst.msk [vmem:[#allocation2 + $0x38] sm:$0xff] %vm226_vm1, %v1217_v37  ;;  %v1243_v47 = vld [vmem:[%s1149_s27 + $0x38] sm:$0x3]  ;;  %v1248_v50 = vsel %vm309_vm2, %v328_v40, %v329_v41  ;;  %v331_v52 = vrot.slane %v1200_v31, 2  ;;  %v1255_v53 = vld [vmem:[%s1149_s27 + $0x80] sm:$0xff]  ;;  %v1258_v54 = vld [vmem:[%s1149_s27 + $0x90] sm:$0xff] }
  0x1c   : > { %284 = vrot.lane.b32.xlu0 %v1205_v32, %s1088_s30  ;;  %v1251_v51 = vsel %vm309_vm2, %v316_v42, %v317_v43  ;;  %560 = vst.msk [vmem:[#allocation2 + $0x48] sm:$0xff] %vm226_vm1, %v1248_v50  ;;  %v332_v56 = vrot.slane %v1240_v46, 2  ;;  %v319_v57 = vrot.slane %v1212_v36, 2  ;;  %v320_v58 = vrot.slane %v1243_v47, 2  ;;  %v216_v59 = vld [vmem:[%s1149_s27 + $0x98] sm:$0x3] }
  0x1d   : > { %556 = vst.msk [vmem:[#allocation2 + $0x8] sm:$0xff] %vm226_vm1, %v1251_v51  ;;  %v314_v61 = vrot.slane %v1178_v22, 2  ;;  %v402_v62 = vrot.slane %v1255_v53, 1  ;;  %v403_v63 = vrot.slane %v214_v48, 1  ;;  %v438_v0 = vrot.slane %v1255_v53, 2  ;;  %v600_v8 = vld [vmem:[%s1578_s1 + $0xa0] sm:$0xff] }
  0x1e   : > { %v1287_v3 = vsel %vm309_vm2, %v331_v52, %v332_v56  ;;  %v1290_v4 = vsel %vm309_vm2, %v319_v57, %v320_v58  ;;  %v439_v5 = vrot.slane %v214_v48, 2  ;;  %v509_v6 = vrot.slane %v1258_v54, 1  ;;  %v601_v9 = vld [vmem:[%s1578_s1 + $0xa8] sm:$0xff]  ;;  %v584_v18 = vld [vmem:[%s1578_s1 + $0x20] sm:$0xff]  ;;  %v602_v23 = vld [vmem:[%s1578_s1 + $0xb0] sm:$0xff] }
  0x1f   : > { %413 = vrot.lane.b32.xlu1 %v1236_v44, %s1089_s8  ;;  %561 = vst.msk [vmem:[#allocation2 + $0x58] sm:$0xff] %vm226_vm1, %v1287_v3  ;;  %557 = vst.msk [vmem:[#allocation2 + $0x18] sm:$0xff] %vm226_vm1, %v1290_v4  ;;  %v1304_v10 = vsel %vm251_vm3, %v402_v62, %v403_v63  ;;  %v545_v11 = vrot.slane %v1258_v54, 2  ;;  %v510_v12 = vrot.slane %v216_v59, 1  ;;  %v546_v14 = vrot.slane %v216_v59, 2  ;;  %v585_v19 = vld [vmem:[%s1578_s1 + $0x28] sm:$0xff] }
  0x20   : > { %405 = vrot.lane.b32.xlu0 %v257_v45, %s1089_s8  ;;  %v1308_v15 = vsel %vm309_vm2, %v438_v0, %v439_v5  ;;  %v956_v22 = vpack.c.bf16 %v601_v9, %v600_v8  ;;  %v603_v24 = vld [vmem:[%s1578_s1 + $0xb8] sm:$0xff]  ;;  %v315_v28 = vsel %vm309_vm2, %v313_v49, %v314_v61  ;;  %v958_v29 = vpack.c.bf16 %v585_v19, %v584_v18  ;;  %v586_v33 = vld [vmem:[%s1578_s1 + $0x30] sm:$0xff]  ;;  %v604_v35 = vld [vmem:[%s1578_s1 + $0xc0] sm:$0xff] }
  0x21   : > { %562 = vst.msk [vmem:[#allocation2 + $0x68] sm:$0xff] %vm226_vm1, %v1308_v15  ;;  %v1322_v20 = vsel %vm251_vm3, %v509_v6, %v510_v12  ;;  %v547_v21 = vsel %vm309_vm2, %v545_v11, %v546_v14  ;;  %v960_v30 = vpack.c.bf16 %v603_v24, %v602_v23  ;;  %v587_v34 = vld [vmem:[%s1578_s1 + $0x38] sm:$0xff]  ;;  %v605_v40 = vld [vmem:[%s1578_s1 + $0xc8] sm:$0xff]  ;;  %v588_v43 = vld [vmem:[%s1578_s1 + $0x40] sm:$0xff]  ;;  %v270_v61 = vrot.slane %v1183_v25, 1 }
  0x22   : > { %563 = vst.msk [vmem:[#allocation2 + $0x78] sm:$0xff] %vm226_vm1, %v547_v21  ;;  %957 = vmatprep.subr.bf16.mxu0 %v956_v22  ;;  %982 = vmatprep.subr.bf16.mxu1 %v956_v22  ;;  %v962_v41 = vpack.c.bf16 %v587_v34, %v586_v33  ;;  %v964_v42 = vpack.c.bf16 %v605_v40, %v604_v35  ;;  %v606_v48 = vld [vmem:[%s1578_s1 + $0xd0] sm:$0xff]  ;;  %v607_v49 = vld [vmem:[%s1578_s1 + $0xd8] sm:$0xff]  ;;  %v608_v59 = vld [vmem:[%s1578_s1 + $0xe0] sm:$0xff]  ;;  %v271_v62 = vrot.slane %v1220_v38, 1  ;;  %v258_v63 = vrot.slane %v1186_v26, 1 }
  0x23   : > { %286 = vrot.lane.b32.xlu1 %v1236_v44, %s1088_s30  ;;  %959 = vmatpush3.bf16.msra.mxu0 %v958_v29  ;;  %v590_v55 = vld [vmem:[%s1578_s1 + $0x50] sm:$0xff]  ;;  %v591_v56 = vld [vmem:[%s1578_s1 + $0x58] sm:$0xff]  ;;  %v573_v58 = vld [vmem:[#allocation2 + $0x48] sm:$0xff]  ;;  %v259_v0 = vrot.slane %v1223_v39, 1  ;;  %v273_v16 = vrot.slane %v1200_v31, 1  ;;  %v274_v17 = vrot.slane %v1240_v46, 1 }
  0x24   : > { %278 = vrot.lane.b32.xlu0 %v257_v45, %s1088_s30  ;;  %990 = vmatpush3.bf16.msra.mxu1 %v958_v29  ;;  %v589_v45 = vld [vmem:[%s1578_s1 + $0x48] sm:$0xff]  ;;  %v970_v1 = vpack.c.bf16 %v591_v56, %v590_v55  ;;  %v592_v5 = vld [vmem:[%s1578_s1 + $0x60] sm:$0xff]  ;;  %v610_v39 = vld [vmem:[%s1578_s1 + $0xf0] sm:$0xff]  ;;  %v272_v8 = vsel %vm251_vm3, %v270_v61, %v271_v62  ;;  %v261_v18 = vrot.slane %v1212_v36, 1  ;;  %v262_v19 = vrot.slane %v1243_v47, 1 }
  0x25   : > { %961 = vmatprep.subr.bf16.mxu0 %v960_v30  ;;  %983 = vmatprep.subr.bf16.mxu1 %v960_v30  ;;  %v966_v52 = vpack.c.bf16 %v589_v45, %v588_v43  ;;  %v565_v57 = vld [vmem:[#allocation2 + $0x8] sm:$0xff]  ;;  %v611_v6 = vld [vmem:[%s1578_s1 + $0xf8] sm:$0xff]  ;;  %v260_v9 = vsel %vm251_vm3, %v258_v63, %v259_v0 }
  0x26   : > { %v609_v60 = vld [vmem:[%s1578_s1 + $0xe8] sm:$0xff]  ;;  %683 = vmatprep.mubr.f32.mxu0 %v565_v57  ;;  %703 = vmatprep.mubr.f32.mxu1 %v573_v58  ;;  %v595_v12 = vld [vmem:[%s1578_s1 + $0x78] sm:$0xff] }
  0x27   : > { %449 = vrot.lane.b32.xlu1 %v1217_v37, %s1090_s10  ;;  %963 = vmatpush3.bf16.msra.mxu0 %v962_v41  ;;  %v972_v2 = vpack.c.bf16 %v609_v60, %v608_v59  ;;  %v593_v38 = vld [vmem:[%s1578_s1 + $0x68] sm:$0xff]  ;;  %v575_v30 = vld [vmem:[#allocation2 + $0x58] sm:$0xff] }
  0x28   : > { %441 = vrot.lane.b32.xlu0 %v315_v28, %s1090_s10  ;;  %991 = vmatpush3.bf16.msra.mxu1 %v962_v41  ;;  %v974_v11 = vpack.c.bf16 %v593_v38, %v592_v5  ;;  %v567_v33 = vld [vmem:[#allocation2 + $0x18] sm:$0xff]  ;;  %v577_v60 = vld [vmem:[#allocation2 + $0x68] sm:$0xff] }
  0x29   : > { %965 = vmatprep.subr.bf16.mxu0 %v964_v42  ;;  %984 = vmatprep.subr.bf16.mxu1 %v964_v42  ;;  %v569_v61 = vld [vmem:[#allocation2 + $0x28] sm:$0xff] }
  0x2b   : > { %344 = vrot.lane.b32.xlu1 %v1217_v37, %s1087_s29  ;;  %v968_v37 = vpack.c.bf16 %v607_v49, %v606_v48  ;;  %967 = vmatpush3.bf16.msra.mxu0 %v966_v52 }
  0x2c   : > { %336 = vrot.lane.b32.xlu0 %v315_v28, %s1087_s29  ;;  %992 = vmatpush3.bf16.msra.mxu1 %v966_v52 }
  0x2d   : > { %969 = vmatprep.subr.bf16.mxu0 %v968_v37  ;;  %985 = vmatprep.subr.bf16.mxu1 %v968_v37 }
  0x2f   : > { %483 = vrot.lane.b32.xlu1 %v1183_v25, %s1091_s7  ;;  %971 = vmatpush3.bf16.msra.mxu0 %v970_v1 }
  0x30   : > { %475 = vrot.lane.b32.xlu0 %v1186_v26, %s1091_s7  ;;  %993 = vmatpush3.bf16.msra.mxu1 %v970_v1 }
  0x31   : > { %973 = vmatprep.subr.bf16.mxu0 %v972_v2  ;;  %986 = vmatprep.subr.bf16.mxu1 %v972_v2 }
  0x33   : > { %378 = vrot.lane.b32.xlu1 %v1183_v25, %s1086_s28  ;;  %v976_v25 = vpack.c.bf16 %v611_v6, %v610_v39  ;;  %975 = vmatpush3.bf16.msra.mxu0 %v974_v11 }
  0x34   : > { %370 = vrot.lane.b32.xlu0 %v1186_v26, %s1086_s28  ;;  %v594_v26 = vld [vmem:[%s1578_s1 + $0x70] sm:$0xff]  ;;  %994 = vmatpush3.bf16.msra.mxu1 %v974_v11 }
  0x35   : > { %v978_v14 = vpack.c.bf16 %v595_v12, %v594_v26  ;;  %977 = vmatprep.subr.bf16.mxu0 %v976_v25  ;;  %987 = vmatprep.subr.bf16.mxu1 %v976_v25 }
  0x37   : > { %520 = vrot.lane.b32.xlu1 %v272_v8, %s1092_s6  ;;  %979 = vmatpush3.bf16.msra.mxu0 %v978_v14 }
  0x38   : > { %512 = vrot.lane.b32.xlu0 %v260_v9, %s1092_s6  ;;  %995 = vmatpush3.bf16.msra.mxu1 %v978_v14 }
  0x3b   : > { %415 = vrot.lane.b32.xlu1 %v272_v8, %s1089_s8 }
  0x3c   : > { %407 = vrot.lane.b32.xlu0 %v260_v9, %s1089_s8 }
  0x3f   : > { %288 = vrot.lane.b32.xlu1 %v272_v8, %s1088_s30 }
  0x40   : > { %280 = vrot.lane.b32.xlu0 %v260_v9, %s1088_s30 }
  0x43   : > { %451 = vrot.lane.b32.xlu1 %v1248_v50, %s1090_s10 }
  0x44   : > { %443 = vrot.lane.b32.xlu0 %v1251_v51, %s1090_s10 }
  0x47   : > { %346 = vrot.lane.b32.xlu1 %v1248_v50, %s1087_s29  ;;  %v275_v50 = vsel %vm251_vm3, %v273_v16, %v274_v17  ;;  %v571_v16 = vld [vmem:[#allocation2 + $0x38] sm:$0xff] }
  0x48   : > { %338 = vrot.lane.b32.xlu0 %v1251_v51, %s1087_s29  ;;  %v263_v51 = vsel %vm251_vm3, %v261_v18, %v262_v19  ;;  %v579_v17 = vld [vmem:[#allocation2 + $0x78] sm:$0xff] }
  0x4b   : > { %485 = vrot.lane.b32.xlu1 %v1200_v31, %s1091_s7 }
  0x4c   : > { %477 = vrot.lane.b32.xlu0 %v1212_v36, %s1091_s7 }
  0x4f   : > { %380 = vrot.lane.b32.xlu1 %v1200_v31, %s1086_s28 }
  0x50   : > { %372 = vrot.lane.b32.xlu0 %v1212_v36, %s1086_s28 }
  0x53   : > { %522 = vrot.lane.b32.xlu1 %v275_v50, %s1092_s6 }
  0x54   : > { %514 = vrot.lane.b32.xlu0 %v263_v51, %s1092_s6 }
  0x57   : > { %417 = vrot.lane.b32.xlu1 %v275_v50, %s1089_s8 }
  0x58   : > { %409 = vrot.lane.b32.xlu0 %v263_v51, %s1089_s8 }
  0x5b   : > { %290 = vrot.lane.b32.xlu1 %v275_v50, %s1088_s30 }
  0x5c   : > { %282 = vrot.lane.b32.xlu0 %v263_v51, %s1088_s30  ;;  %s891_s30 = sshll.u32 %s1586_s12, 6 }
  0x5f   : > { %453 = vrot.lane.b32.xlu1 %v1287_v3, %s1090_s10 }
  0x60   : > { %445 = vrot.lane.b32.xlu0 %v1290_v4, %s1090_s10 }
  0x63   : > { %348 = vrot.lane.b32.xlu1 %v1287_v3, %s1087_s29 }
  0x64   : > { %340 = vrot.lane.b32.xlu0 %v1290_v4, %s1087_s29 }
  0x67   : > { %487 = vrot.lane.b32.xlu1 %v1255_v53, %s1091_s7 }
  0x68   : > { %479 = vrot.lane.b32.xlu0 %v1164_v13, %s1091_s7 }
  0x6b   : > { %382 = vrot.lane.b32.xlu1 %v1255_v53, %s1086_s28 }
  0x6c   : > { %374 = vrot.lane.b32.xlu0 %v1164_v13, %s1086_s28 }
  0x6f   : > { %524 = vrot.lane.b32.xlu1 %v1304_v10, %s1092_s6 }
  0x70   : > { %516 = vrot.lane.b32.xlu0 %v1205_v32, %s1092_s6 }
  0x73   : > { %419 = vrot.lane.b32.xlu1 %v1304_v10, %s1089_s8 }
  0x74   : > { %411 = vrot.lane.b32.xlu0 %v1205_v32, %s1089_s8 }
  0x77   : > { %455 = vrot.lane.b32.xlu1 %v1308_v15, %s1090_s10 }
  0x78   : > { %447 = vrot.lane.b32.xlu0 %v1191_v27, %s1090_s10 }
  0x7b   : > { %489 = vrot.lane.b32.xlu1 %v1258_v54, %s1091_s7 }
  0x7c   : > { %481 = vrot.lane.b32.xlu0 %v1152_v7, %s1091_s7  ;;  %s1544_s7 = scalar_lea.vmem %s1580_s3, %s891_s30 }
  0x7f   : > { %526 = vrot.lane.b32.xlu1 %v1322_v20, %s1092_s6 }
  0x80   : > { %518 = vrot.lane.b32.xlu0 %v1236_v44, %s1092_s6 }
  0x85   : > { %v377_v13 = vpop.permute.xlu1 %376 }
  0x86   : > { %v369_v31 = vpop.permute.xlu0 %368 }
  0x89   : > { %v335_v32 = vpop.permute.xlu1 %334 }
  0x8a   : > { %v277_v36 = vpop.permute.xlu0 %276 }
  0x8b   : > { %301 = vst.msk [vmem:[#allocation2] sm:$0xff] %vm300_vm4, %v277_v36 }
  0x8c   : > { %359 = vst.msk [vmem:[#allocation2] sm:$0xff] %vm358_vm5, %v335_v32 }
  0x8d   : > { %393 = vst.msk [vmem:[#allocation2] sm:$0xff] %vm392_vm6, %v369_v31  ;;  %v343_v7 = vpop.permute.xlu1 %342 }
  0x8e   : > { %v285_v27 = vpop.permute.xlu0 %284 }
  0x8f   : > { %305 = vst.msk [vmem:[#allocation2 + $0x40] sm:$0xff] %vm300_vm4, %v285_v27 }
  0x90   : > { %363 = vst.msk [vmem:[#allocation2 + $0x40] sm:$0xff] %vm358_vm5, %v343_v7 }
  0x91   : > { %397 = vst.msk [vmem:[#allocation2 + $0x40] sm:$0xff] %vm392_vm6, %v377_v13  ;;  %v414_v44 = vpop.permute.xlu1 %413 }
  0x92   : > { %v406_v46 = vpop.permute.xlu0 %405  ;;  %434 = vst.msk [vmem:[#allocation2 + $0x40] sm:$0xff] %vm429_vm7, %v414_v44 }
  0x93   : > { %430 = vst.msk [vmem:[#allocation2] sm:$0xff] %vm429_vm7, %v406_v46 }
  0x95   : > { %v287_v47 = vpop.permute.xlu1 %286 }
  0x96   : > { %v279_v53 = vpop.permute.xlu0 %278  ;;  %306 = vst.msk [vmem:[#allocation2 + $0x50] sm:$0xff] %vm300_vm4, %v287_v47  ;;  %v1536_v47 = vld [vmem:[%s1579_s2] ss:$0 sm:$0xff] }
  0x97   : > { %302 = vst.msk [vmem:[#allocation2 + $0x10] sm:$0xff] %vm300_vm4, %v279_v53 }
  0x99   : > { %v450_v54 = vpop.permute.xlu1 %449 }
  0x9a   : > { %v442_v3 = vpop.permute.xlu0 %441  ;;  %470 = vst.msk [vmem:[#allocation2 + $0x40] sm:$0xff] %vm465_vm8, %v450_v54 }
  0x9b   : > { %466 = vst.msk [vmem:[#allocation2] sm:$0xff] %vm465_vm8, %v442_v3 }
  0x9d   : > { %v345_v4 = vpop.permute.xlu1 %344 }
  0x9e   : > { %v337_v10 = vpop.permute.xlu0 %336  ;;  %364 = vst.msk [vmem:[#allocation2 + $0x50] sm:$0xff] %vm358_vm5, %v345_v4 }
  0x9f   : > { %360 = vst.msk [vmem:[#allocation2 + $0x10] sm:$0xff] %vm358_vm5, %v337_v10 }
  0xa1   : > { %v484_v15 = vpop.permute.xlu1 %483 }
  0xa2   : > { %v476_v20 = vpop.permute.xlu0 %475  ;;  %504 = vst.msk [vmem:[#allocation2 + $0x40] sm:$0xff] %vm499_vm9, %v484_v15 }
  0xa3   : > { %500 = vst.msk [vmem:[#allocation2] sm:$0xff] %vm499_vm9, %v476_v20 }
  0xa5   : > { %v379_v21 = vpop.permute.xlu1 %378 }
  0xa6   : > { %v371_v22 = vpop.permute.xlu0 %370  ;;  %398 = vst.msk [vmem:[#allocation2 + $0x50] sm:$0xff] %vm392_vm6, %v379_v21 }
  0xa7   : > { %394 = vst.msk [vmem:[#allocation2 + $0x10] sm:$0xff] %vm392_vm6, %v371_v22 }
  0xa9   : > { %v521_v23 = vpop.permute.xlu1 %520 }
  0xaa   : > { %v513_v24 = vpop.permute.xlu0 %512  ;;  %541 = vst.msk [vmem:[#allocation2 + $0x40] sm:$0xff] %vm536_vm10, %v521_v23 }
  0xab   : > { %537 = vst.msk [vmem:[#allocation2] sm:$0xff] %vm536_vm10, %v513_v24 }
  0xad   : > { %v416_v28 = vpop.permute.xlu1 %415 }
  0xae   : > { %v408_v29 = vpop.permute.xlu0 %407  ;;  %435 = vst.msk [vmem:[#allocation2 + $0x50] sm:$0xff] %vm429_vm7, %v416_v28 }
  0xaf   : > { %431 = vst.msk [vmem:[#allocation2 + $0x10] sm:$0xff] %vm429_vm7, %v408_v29 }
  0xb1   : > { %v289_v34 = vpop.permute.xlu1 %288  ;;  %v572_v41 = vld [vmem:[#allocation2 + $0x40] sm:$0xff] }
  0xb2   : > { %v281_v35 = vpop.permute.xlu0 %280  ;;  %v564_v40 = vld [vmem:[#allocation2] sm:$0xff]  ;;  %307 = vst.msk [vmem:[#allocation2 + $0x60] sm:$0xff] %vm300_vm4, %v289_v34  ;;  %704 = vmatmul.mubr.f32.vlgmr.msra.gmra.mrb[0].mxu1 %v572_v41 }
  0xb3   : > { %303 = vst.msk [vmem:[#allocation2 + $0x20] sm:$0xff] %vm300_vm4, %v281_v35  ;;  %684 = vmatmul.mubr.f32.vlgmr.msra.gmra.mrb[0].mxu0 %v564_v40  ;;  %708 = vmatprep.mubr.f32.mxu1 %v575_v30 }
  0xb4   : > { %688 = vmatprep.mubr.f32.mxu0 %v567_v33 }
  0xb5   : > { %v452_v42 = vpop.permute.xlu1 %451 }
  0xb6   : > { %v444_v43 = vpop.permute.xlu0 %443  ;;  %471 = vst.msk [vmem:[#allocation2 + $0x50] sm:$0xff] %vm465_vm8, %v452_v42 }
  0xb7   : > { %467 = vst.msk [vmem:[#allocation2 + $0x10] sm:$0xff] %vm465_vm8, %v444_v43 }
  0xb9   : > { %v347_v45 = vpop.permute.xlu1 %346 }
  0xba   : > { %v339_v48 = vpop.permute.xlu0 %338  ;;  %365 = vst.msk [vmem:[#allocation2 + $0x60] sm:$0xff] %vm358_vm5, %v347_v45 }
  0xbb   : > { %361 = vst.msk [vmem:[#allocation2 + $0x20] sm:$0xff] %vm358_vm5, %v339_v48 }
  0xbd   : > { %v486_v49 = vpop.permute.xlu1 %485 }
  0xbe   : > { %v478_v52 = vpop.permute.xlu0 %477  ;;  %505 = vst.msk [vmem:[#allocation2 + $0x50] sm:$0xff] %vm499_vm9, %v486_v49 }
  0xbf   : > { %501 = vst.msk [vmem:[#allocation2 + $0x10] sm:$0xff] %vm499_vm9, %v478_v52 }
  0xc1   : > { %v381_v55 = vpop.permute.xlu1 %380 }
  0xc2   : > { %v373_v37 = vpop.permute.xlu0 %372  ;;  %399 = vst.msk [vmem:[#allocation2 + $0x60] sm:$0xff] %vm392_vm6, %v381_v55 }
  0xc3   : > { %395 = vst.msk [vmem:[#allocation2 + $0x20] sm:$0xff] %vm392_vm6, %v373_v37 }
  0xc5   : > { %v523_v56 = vpop.permute.xlu1 %522 }
  0xc6   : > { %v515_v57 = vpop.permute.xlu0 %514  ;;  %542 = vst.msk [vmem:[#allocation2 + $0x50] sm:$0xff] %vm536_vm10, %v523_v56 }
  0xc7   : > { %538 = vst.msk [vmem:[#allocation2 + $0x10] sm:$0xff] %vm536_vm10, %v515_v57 }
  0xc9   : > { %v418_v58 = vpop.permute.xlu1 %417 }
  0xca   : > { %v410_v59 = vpop.permute.xlu0 %409  ;;  %436 = vst.msk [vmem:[#allocation2 + $0x60] sm:$0xff] %vm429_vm7, %v418_v58 }
  0xcb   : > { %432 = vst.msk [vmem:[#allocation2 + $0x20] sm:$0xff] %vm429_vm7, %v410_v59 }
  0xcd   : > { %v291_v62 = vpop.permute.xlu1 %290  ;;  %v574_v1 = vld [vmem:[#allocation2 + $0x50] sm:$0xff] }
  0xce   : > { %v283_v63 = vpop.permute.xlu0 %282  ;;  %v566_v0 = vld [vmem:[#allocation2 + $0x10] sm:$0xff]  ;;  %308 = vst.msk [vmem:[#allocation2 + $0x70] sm:$0xff] %vm300_vm4, %v291_v62  ;;  %709 = vmatmul.mubr.f32.gmra.mrb[2].mxu1 %v574_v1 }
  0xcf   : > { %304 = vst.msk [vmem:[#allocation2 + $0x30] sm:$0xff] %vm300_vm4, %v283_v63  ;;  %689 = vmatmul.mubr.f32.gmra.mrb[2].mxu0 %v566_v0  ;;  %713 = vmatprep.mubr.f32.mxu1 %v577_v60 }
  0xd0   : > { %693 = vmatprep.mubr.f32.mxu0 %v569_v61 }
  0xd1   : > { %v454_v2 = vpop.permute.xlu1 %453 }
  0xd2   : > { %v446_v5 = vpop.permute.xlu0 %445  ;;  %472 = vst.msk [vmem:[#allocation2 + $0x60] sm:$0xff] %vm465_vm8, %v454_v2 }
  0xd3   : > { %468 = vst.msk [vmem:[#allocation2 + $0x20] sm:$0xff] %vm465_vm8, %v446_v5 }
  0xd5   : > { %v349_v38 = vpop.permute.xlu1 %348 }
  0xd6   : > { %v341_v39 = vpop.permute.xlu0 %340  ;;  %366 = vst.msk [vmem:[#allocation2 + $0x70] sm:$0xff] %vm358_vm5, %v349_v38 }
  0xd7   : > { %362 = vst.msk [vmem:[#allocation2 + $0x30] sm:$0xff] %vm358_vm5, %v341_v39 }
  0xd9   : > { %v488_v6 = vpop.permute.xlu1 %487 }
  0xda   : > { %v480_v8 = vpop.permute.xlu0 %479  ;;  %506 = vst.msk [vmem:[#allocation2 + $0x60] sm:$0xff] %vm499_vm9, %v488_v6 }
  0xdb   : > { %502 = vst.msk [vmem:[#allocation2 + $0x20] sm:$0xff] %vm499_vm9, %v480_v8 }
  0xdd   : > { %v383_v9 = vpop.permute.xlu1 %382 }
  0xde   : > { %v375_v11 = vpop.permute.xlu0 %374  ;;  %400 = vst.msk [vmem:[#allocation2 + $0x70] sm:$0xff] %vm392_vm6, %v383_v9 }
  0xdf   : > { %396 = vst.msk [vmem:[#allocation2 + $0x30] sm:$0xff] %vm392_vm6, %v375_v11 }
  0xe1   : > { %v525_v25 = vpop.permute.xlu1 %524 }
  0xe2   : > { %v517_v26 = vpop.permute.xlu0 %516  ;;  %543 = vst.msk [vmem:[#allocation2 + $0x60] sm:$0xff] %vm536_vm10, %v525_v25 }
  0xe3   : > { %539 = vst.msk [vmem:[#allocation2 + $0x20] sm:$0xff] %vm536_vm10, %v517_v26 }
  0xe5   : > { %v420_v12 = vpop.permute.xlu1 %419 }
  0xe6   : > { %v412_v14 = vpop.permute.xlu0 %411  ;;  %437 = vst.msk [vmem:[#allocation2 + $0x70] sm:$0xff] %vm429_vm7, %v420_v12 }
  0xe7   : > { %433 = vst.msk [vmem:[#allocation2 + $0x30] sm:$0xff] %vm429_vm7, %v412_v14 }
  0xe9   : > { %v456_v18 = vpop.permute.xlu1 %455  ;;  %v576_v51 = vld [vmem:[#allocation2 + $0x60] sm:$0xff] }
  0xea   : > { %v448_v19 = vpop.permute.xlu0 %447  ;;  %v568_v50 = vld [vmem:[#allocation2 + $0x20] sm:$0xff]  ;;  %473 = vst.msk [vmem:[#allocation2 + $0x70] sm:$0xff] %vm465_vm8, %v456_v18  ;;  %714 = vmatmul.mubr.f32.gmra.mrb[4].mxu1 %v576_v51 }
  0xeb   : > { %469 = vst.msk [vmem:[#allocation2 + $0x30] sm:$0xff] %vm465_vm8, %v448_v19  ;;  %694 = vmatmul.mubr.f32.gmra.mrb[4].mxu0 %v568_v50  ;;  %718 = vmatprep.mubr.f32.mxu1 %v579_v17 }
  0xec   : > { %698 = vmatprep.mubr.f32.mxu0 %v571_v16 }
  0xed   : > { %v490_v13 = vpop.permute.xlu1 %489 }
  0xee   : > { %v482_v31 = vpop.permute.xlu0 %481  ;;  %507 = vst.msk [vmem:[#allocation2 + $0x70] sm:$0xff] %vm499_vm9, %v490_v13 }
  0xef   : > { %503 = vst.msk [vmem:[#allocation2 + $0x30] sm:$0xff] %vm499_vm9, %v482_v31 }
  0xf1   : > { %v527_v32 = vpop.permute.xlu1 %526 }
  0xf2   : > { %v519_v36 = vpop.permute.xlu0 %518  ;;  %544 = vst.msk [vmem:[#allocation2 + $0x70] sm:$0xff] %vm536_vm10, %v527_v32 }
  0xf3   : > { %540 = vst.msk [vmem:[#allocation2 + $0x30] sm:$0xff] %vm536_vm10, %v519_v36 }
  0xf9   : > { %v578_v27 = vld [vmem:[#allocation2 + $0x70] sm:$0xff] }
  0xfa   : > { %v570_v7 = vld [vmem:[#allocation2 + $0x30] sm:$0xff]  ;;  %719 = vmatmul.mubr.f32.gmra.mrb[6].mxu1 %v578_v27 }
  0xfb   : > { %699 = vmatmul.mubr.f32.gmra.mrb[6].mxu0 %v570_v7 }
 0x185   : > { %v936_v46 = vpop.f32.mrb[0].mxu1 }
 0x186   : > { %v924_v44 = vpop.f32.mrb[0].mxu0  ;;  %v937_v54 = vpop.f32.mrb[1].mxu1 }
 0x187   : > { %v925_v53 = vpop.f32.mrb[1].mxu0  ;;  %v938_v4 = vadd.f32 %v937_v54, %v936_v46 }
 0x188   : > { %v926_v3 = vadd.f32 %v925_v53, %v924_v44 }
 0x189   : > { %v706_v15 = vadd.f32 %v938_v4, %v1536_v47 }
 0x18a   : > { %v686_v10 = vadd.f32 %v926_v3, %v1536_v47 }
 0x18b   : > { %v885_v21 = vmul.f32 -1.442695, %v706_v15 }
 0x18c   : > { %v881_v20 = vmul.f32 -1.442695, %v686_v10 }
 0x18e   : > { %1029 = vpow2.f32 %v881_v20 }
 0x18f   : > { %1031 = vpow2.f32 %v885_v21 }
 0x198   : > { %v1030_v22 = vpop.eup %1029 }
 0x199   : > { %v1032_v23 = vpop.eup %1031  ;;  %v748_v24 = vadd.f32 1.0, %v1030_v22 }
 0x19a   : > { %v752_v28 = vadd.f32 1.0, %v1032_v23 }
 0x19b   : > { %1033 = vrcp.f32 %v748_v24 }
 0x19c   : > { %1035 = vrcp.f32 %v752_v28 }
 0x1a1   : > { %v939_v30 = vpop.f32.mrb[2].mxu1 }
 0x1a2   : > { %v927_v29 = vpop.f32.mrb[2].mxu0  ;;  %v940_v34 = vpop.f32.mrb[3].mxu1 }
 0x1a3   : > { %v928_v33 = vpop.f32.mrb[3].mxu0  ;;  %v941_v40 = vadd.f32 %v940_v34, %v939_v30 }
 0x1a4   : > { %v929_v35 = vadd.f32 %v928_v33, %v927_v29 }
 0x1a5   : > { %v1034_v41 = vpop.eup %1033  ;;  %v711_v48 = vadd.f32 %v941_v40, %v1536_v47 }
 0x1a6   : > { %v1036_v42 = vpop.eup %1035  ;;  %v772_v43 = vmul.f32 %v1034_v41, %v686_v10  ;;  %v691_v45 = vadd.f32 %v929_v35, %v1536_v47 }
 0x1a7   : > { %v776_v49 = vmul.f32 %v1036_v42, %v706_v15  ;;  %v886_v55 = vmul.f32 -1.442695, %v711_v48 }
 0x1a8   : > { %781 = vst.msk [vmem:[%s1544_s7] sm:$0xff] %vm780_vm11, %v772_v43  ;;  %v882_v52 = vmul.f32 -1.442695, %v691_v45 }
 0x1a9   : > { %785 = vst.msk [vmem:[%s1544_s7 + $0x20] sm:$0xff] %vm780_vm11, %v776_v49 }
 0x1aa   : > { %1037 = vpow2.f32 %v882_v52 }
 0x1ab   : > { %1039 = vpow2.f32 %v886_v55 }
 0x1b4   : > { %v1038_v37 = vpop.eup %1037 }
 0x1b5   : > { %v1040_v56 = vpop.eup %1039  ;;  %v749_v57 = vadd.f32 1.0, %v1038_v37 }
 0x1b6   : > { %v753_v58 = vadd.f32 1.0, %v1040_v56 }
 0x1b7   : > { %1041 = vrcp.f32 %v749_v57 }
 0x1b8   : > { %1043 = vrcp.f32 %v753_v58 }
 0x1bd   : > { %v942_v60 = vpop.f32.mrb[4].mxu1 }
 0x1be   : > { %v930_v59 = vpop.f32.mrb[4].mxu0  ;;  %v943_v62 = vpop.f32.mrb[5].mxu1 }
 0x1bf   : > { %v931_v61 = vpop.f32.mrb[5].mxu0  ;;  %v944_v0 = vadd.f32 %v943_v62, %v942_v60 }
 0x1c0   : > { %v932_v63 = vadd.f32 %v931_v61, %v930_v59 }
 0x1c1   : > { %v1042_v1 = vpop.eup %1041  ;;  %v716_v39 = vadd.f32 %v944_v0, %v1536_v47 }
 0x1c2   : > { %v1044_v2 = vpop.eup %1043  ;;  %v773_v5 = vmul.f32 %v1042_v1, %v691_v45  ;;  %v696_v38 = vadd.f32 %v932_v63, %v1536_v47 }
 0x1c3   : > { %v777_v6 = vmul.f32 %v1044_v2, %v711_v48  ;;  %v887_v9 = vmul.f32 -1.442695, %v716_v39 }
 0x1c4   : > { %782 = vst.msk [vmem:[%s1544_s7 + $0x8] sm:$0xff] %vm780_vm11, %v773_v5  ;;  %v883_v8 = vmul.f32 -1.442695, %v696_v38 }
 0x1c5   : > { %786 = vst.msk [vmem:[%s1544_s7 + $0x28] sm:$0xff] %vm780_vm11, %v777_v6 }
 0x1c6   : > { %1045 = vpow2.f32 %v883_v8 }
 0x1c7   : > { %1047 = vpow2.f32 %v887_v9 }
 0x1cd   : > { %v945_v25 = vpop.f32.mrb[6].mxu1 }
 0x1ce   : > { %v933_v11 = vpop.f32.mrb[6].mxu0  ;;  %v946_v12 = vpop.f32.mrb[7].mxu1 }
 0x1cf   : > { %v934_v26 = vpop.f32.mrb[7].mxu0  ;;  %v947_v17 = vadd.f32 %v946_v12, %v945_v25 }
 0x1d0   : > { %v1046_v14 = vpop.eup %1045  ;;  %v935_v16 = vadd.f32 %v934_v26, %v933_v11 }
 0x1d1   : > { %v1048_v18 = vpop.eup %1047  ;;  %v750_v19 = vadd.f32 1.0, %v1046_v14  ;;  %v721_v13 = vadd.f32 %v947_v17, %v1536_v47 }
 0x1d2   : > { %v754_v50 = vadd.f32 1.0, %v1048_v18  ;;  %v701_v51 = vadd.f32 %v935_v16, %v1536_v47 }
 0x1d3   : > { %1049 = vrcp.f32 %v750_v19  ;;  %v888_v32 = vmul.f32 -1.442695, %v721_v13 }
 0x1d4   : > { %1051 = vrcp.f32 %v754_v50  ;;  %v884_v31 = vmul.f32 -1.442695, %v701_v51 }
 0x1d6   : > { %1053 = vpow2.f32 %v884_v31 }
 0x1d7   : > { %1055 = vpow2.f32 %v888_v32 }
 0x1dd   : > { %v1050_v36 = vpop.eup %1049 }
 0x1de   : > { %v1052_v7 = vpop.eup %1051  ;;  %v774_v27 = vmul.f32 %v1050_v36, %v696_v38 }
 0x1df   : > { %v778_v44 = vmul.f32 %v1052_v7, %v716_v39 }
 0x1e0   : > { %v1054_v46 = vpop.eup %1053  ;;  %783 = vst.msk [vmem:[%s1544_s7 + $0x10] sm:$0xff] %vm780_vm11, %v774_v27 }
 0x1e1   : > { %v1056_v53 = vpop.eup %1055  ;;  %787 = vst.msk [vmem:[%s1544_s7 + $0x30] sm:$0xff] %vm780_vm11, %v778_v44  ;;  %v751_v54 = vadd.f32 1.0, %v1054_v46 }
 0x1e2   : > { %v755_v47 = vadd.f32 1.0, %v1056_v53 }
 0x1e3   : > { %1057 = vrcp.f32 %v751_v54 }
 0x1e4   : > { %1059 = vrcp.f32 %v755_v47 }
 0x1ed   : > { %v1058_v3 = vpop.eup %1057 }
 0x1ee   : > { %v1060_v4 = vpop.eup %1059  ;;  %v775_v10 = vmul.f32 %v1058_v3, %v701_v51 }
 0x1ef   : > { %v779_v15 = vmul.f32 %v1060_v4, %v721_v13 }
 0x1f0   : > { %784 = vst.msk [vmem:[%s1544_s7 + $0x18] sm:$0xff] %vm780_vm11, %v775_v10 }
 0x1f1   : > { %788 = vst.msk [vmem:[%s1544_s7 + $0x38] sm:$0xff] %vm780_vm11, %v779_v15 }
 0x1f2 PF: > { %s13_s14 = sadd.s32 1, %s1083_s14   ;;  %s1581_s12 = smov %s1079_s13 }
 0x1f3   : > { %p10_p5 = scmp.ge.s32.totalorder %s13_s14, 4   ;;  %s1582_s13 = smov %s1584_s15 }
 0x1f5   :  { %12 = sbr.rel (!%p10_p5) target bundleno = 2 (0x2), region = 63 }

</bundles_post_ra>
